<compile_context>
chip_gen: v5e
topology: v5e:2x2
jax: 0.10.0
libtpu: 0.0.40
codegen_flags: <defaults>
</compile_context>

<pallas_src>
import functools

import jax
import jax.numpy as jnp
from jax import lax
from jax.experimental import pallas as pl
from jax.experimental.pallas import tpu as pltpu

BN_EPS = 1e-5
LANE = 128


def _round_up(x, m):
    return ((x + m - 1) // m) * m


def _apply_activation(y, activation):
    if activation == "relu":
        return jnp.maximum(y, 0.0)
    elif activation == "sigmoid":
        return jax.nn.sigmoid(y)
    elif activation == "leakyrelu":
        return jnp.where(y >= 0.0, y, 0.2 * y)
    elif activation == "tanh":
        return jnp.tanh(y)
    else:
        raise ValueError("Unknown activation type %s" % activation)


# ---------------------------------------------------------------------------
# Kernel
# ---------------------------------------------------------------------------
def _fused_decoder_kernel(*refs, n_hidden, activation, batchnorm, out_widths,
                          matmul_dtype):
    """One batch tile of the whole decoder, fully fused in VMEM.

    refs layout:
      refs[0]                    : x tile      (TB, D0)
      refs[1 : 2 + n_hidden]     : weights     (K_pad_i, N_pad_i) lane-padded,
                                                resident across the batch grid
      refs[-2]                   : packed vecs (n_vec, D_max)
                                     BN:   [gamma_0, beta_0, ..., b_last]
                                     else: [b_0, ..., b_{L-1}, b_last]
      refs[-1]                   : out tile    (TB, Dout_pad)
    """
    x_ref = refs[0]
    w_refs = refs[1:1 + n_hidden + 1]
    vec_ref = refs[-2]
    out_ref = refs[-1]

    z = x_ref[...].astype(jnp.float32)
    inv_b = jnp.float32(1.0 / z.shape[0])
    vecs = vec_ref[...]                      # tiny slab, load once

    def _dot(a, w):
        if matmul_dtype is not None:
            a = a.astype(matmul_dtype)       # w is already stored in matmul_dtype
            w = w.astype(matmul_dtype)
        return jnp.dot(a, w, preferred_element_type=jnp.float32)

    row = 0
    for i in range(n_hidden):
        d = out_widths[i]                    # padded (lane-dense) layer width
        y = _dot(z, w_refs[i][...])
        if batchnorm:
            gamma = vecs[row:row + 1, :d]
            beta = vecs[row + 1:row + 2, :d]
            row += 2
            # NOTE: Linear bias omitted on purpose -- exactly cancelled by the
            # batch-mean subtraction below.
            s = jnp.sum(y, axis=0, keepdims=True)
            ss = jnp.sum(y * y, axis=0, keepdims=True)
            mean = s * inv_b
            # One-pass variance can go slightly negative from cancellation
            # (especially with bf16 MXU operands) -> clamp before rsqrt.
            var = jnp.maximum(ss * inv_b - mean * mean, 0.0)
            y = (y - mean) * lax.rsqrt(var + BN_EPS)   # rsqrt -> EUP slot
            y = gamma * y + beta
        else:
            y = y + vecs[row:row + 1, :d]
            row += 1
        z = _apply_activation(y, activation)

    # Final plain Linear (lane-padded output; padded columns are zero).
    y = _dot(z, w_refs[n_hidden][...]) + vecs[row:row + 1, :out_widths[n_hidden]]
    out_ref[...] = y.astype(out_ref.dtype)


# ---------------------------------------------------------------------------
# One-time parameter preprocessing (padding / packing / dtype)
# ---------------------------------------------------------------------------
def prepare_decoder_params(params, batchnorm=True, matmul_dtype=None):
    """Hoisted, call-once preprocessing:

      * lane-pad every layer output width to a multiple of 128 (zero pad rows
        of the next weight correspondingly) -> lane-dense vregs / unmasked vst,
      * optionally store weights in the MXU dtype (bf16) so weight DMA bytes
        and VMEM residency are halved,
      * pack all per-layer (1, D) gamma/beta/bias vectors into ONE 2-D slab.
    """
    n_layers = len(params)
    n_hidden = n_layers - 1
    d_in0 = params[0]["w"].shape[0]

    out_widths = tuple(_round_up(p["w"].shape[1], LANE) for p in params)
    d_max = max(out_widths)
    w_dtype = matmul_dtype if matmul_dtype is not None else jnp.float32

    weights = []
    vec_rows = []
    for i in range(n_layers):
        w = params[i]["w"]
        k, n = w.shape
        k_pad = d_in0 if i == 0 else out_widths[i - 1]
        n_pad = out_widths[i]
        weights.append(jnp.pad(w, ((0, k_pad - k), (0, n_pad - n))).astype(w_dtype))
        if i < n_hidden:
            if batchnorm:
                vec_rows.append(jnp.pad(params[i]["gamma"], ((0, 0), (0, d_max - n))))
                vec_rows.append(jnp.pad(params[i]["beta"], ((0, 0), (0, d_max - n))))
            else:
                vec_rows.append(jnp.pad(params[i]["b"], ((0, 0), (0, d_max - n))))
        else:
            vec_rows.append(jnp.pad(params[i]["b"], ((0, 0), (0, d_max - n))))
    vectors = jnp.concatenate(vec_rows, axis=0).astype(jnp.float32)

    return {
        "weights": weights,
        "vectors": vectors,
        "out_widths": out_widths,
        "d_in": d_in0,
        "d_out": params[-1]["w"].shape[1],
        "n_hidden": n_hidden,
        "batchnorm": batchnorm,
        "matmul_dtype": matmul_dtype,
    }


# ---------------------------------------------------------------------------
# Forward wrapper
# ---------------------------------------------------------------------------
def decoder_forward(z, prepared, activation="relu", batch_tile=None):
    """Run the whole decoder as one fused Pallas call (batch-gridded when
    batchnorm=False)."""
    weights = prepared["weights"]
    vectors = prepared["vectors"]
    out_widths = prepared["out_widths"]
    n_hidden = prepared["n_hidden"]
    batchnorm = prepared["batchnorm"]
    matmul_dtype = prepared["matmul_dtype"]
    d_out = prepared["d_out"]
    d_out_pad = out_widths[-1]

    B, d_in = z.shape
    assert d_in == prepared["d_in"]

    # Batch tiling: only without batchnorm (BN needs full-batch statistics).
    # TODO(synk): two-phase (accumulate-then-normalize) BN for very large B.
    if batchnorm or batch_tile is None:
        tb = B
    else:
        tb = min(batch_tile, B)
        if tb % 8 != 0 or B % tb != 0:
            tb = B   # TODO(synk): ragged / unaligned batch tiles via masking.
    nb = B // tb

    inputs = [z] + list(weights) + [vectors]

    in_specs = [pl.BlockSpec((tb, d_in), lambda i: (i, 0))]
    for w in weights:
        in_specs.append(pl.BlockSpec(w.shape, lambda i: (0, 0)))   # resident
    in_specs.append(pl.BlockSpec(vectors.shape, lambda i: (0, 0)))
    out_spec = pl.BlockSpec((tb, d_out_pad), lambda i: (i, 0))

    # Cost estimate (padded dims) for XLA scheduling around the tiny call.
    flops = 0
    prev = d_in
    for i in range(n_hidden + 1):
        flops += 2 * B * prev * out_widths[i]
        prev = out_widths[i]
    transcendentals = 0
    if batchnorm:
        transcendentals += sum(out_widths[:n_hidden]) * nb      # rsqrt per feature
    if activation in ("sigmoid", "tanh"):
        transcendentals += B * sum(out_widths[:n_hidden])
    bytes_accessed = (sum(int(a.size) * a.dtype.itemsize for a in inputs)
                      + B * d_out_pad * jnp.dtype(z.dtype).itemsize)

    # Explicit VMEM budget: resident weights + double-buffered tile I/O +
    # a few live f32 activation temporaries.  Safe on v7x (64 MiB) and v5e
    # (16 MiB scoped default).
    weight_bytes = sum(int(w.size) * w.dtype.itemsize for w in weights)
    vec_bytes = int(vectors.size) * 4
    io_bytes = 2 * 2 * (tb * d_in + tb * d_out_pad) * 4
    act_bytes = 4 * tb * max(out_widths) * 4
    vmem_limit = int(min(max(2 * weight_bytes + 2 * vec_bytes + io_bytes
                             + act_bytes + (4 << 20), 16 << 20), 64 << 20))

    kernel = functools.partial(
        _fused_decoder_kernel,
        n_hidden=n_hidden,
        activation=activation,
        batchnorm=batchnorm,
        out_widths=out_widths,
        matmul_dtype=matmul_dtype,
    )

    out_padded = pl.pallas_call(
        kernel,
        out_shape=jax.ShapeDtypeStruct((B, d_out_pad), z.dtype),
        grid=(nb,),
        in_specs=in_specs,
        out_specs=out_spec,
        compiler_params=pltpu.CompilerParams(
            # batch tiles are independent when there is no batchnorm -> let the
            # megacore (v7x dual-TC) shard the axis.
            dimension_semantics=("arbitrary",) if nb == 1 else ("parallel",),
            vmem_limit_bytes=vmem_limit,
        ),
        cost_estimate=pl.CostEstimate(
            flops=flops,
            transcendentals=transcendentals,
            bytes_accessed=bytes_accessed,
        ),
    )(*inputs)

    return out_padded[:, :d_out]


# ---------------------------------------------------------------------------
# Synthetic init + pure-JAX reference
# ---------------------------------------------------------------------------
def init_decoder_params(key, decoder_dim):
    """Deterministic synthetic init (PyTorch-Linear-style uniform bounds)."""
    params = []
    for i in range(len(decoder_dim) - 1):
        d_in, d_out = decoder_dim[i], decoder_dim[i + 1]
        key, kw, kb = jax.random.split(key, 3)
        bound = 1.0 / (d_in ** 0.5)
        w = jax.random.uniform(kw, (d_in, d_out), jnp.float32, -bound, bound)
        b = jax.random.uniform(kb, (1, d_out), jnp.float32, -bound, bound)
        gamma = jnp.ones((1, d_out), jnp.float32)    # BatchNorm1d weight init
        beta = jnp.zeros((1, d_out), jnp.float32)    # BatchNorm1d bias init
        params.append({"w": w, "b": b, "gamma": gamma, "beta": beta})
    return params


def decoder_reference(z, params, activation="relu", batchnorm=True):
    """Pure-JAX reference (mirrors the PyTorch forward exactly, bias kept)."""
    for i in range(len(params) - 1):
        p = params[i]
        y = z @ p["w"] + p["b"]
        if batchnorm:
            mean = jnp.mean(y, axis=0, keepdims=True)
            var = jnp.mean((y - mean) ** 2, axis=0, keepdims=True)
            y = p["gamma"] * (y - mean) / jnp.sqrt(var + BN_EPS) + p["beta"]
        z = _apply_activation(y, activation)
    p = params[-1]
    return z @ p["w"] + p["b"]


if __name__ == "__main__":
    key = jax.random.PRNGKey(0)
    decoder_dim = [32, 64, 48, 16]   # small synthetic dims

    # --- Test 1: batchnorm=True, relu, f32, single fused full-batch block ---
    batch = 8
    key, kz, kp = jax.random.split(key, 3)
    z = jax.random.normal(kz, (batch, decoder_dim[0]), jnp.float32)
    params = init_decoder_params(kp, decoder_dim)

    prep = prepare_decoder_params(params, batchnorm=True, matmul_dtype=None)
    out = jax.block_until_ready(decoder_forward(z, prep, activation="relu"))
    ref = decoder_reference(z, params, activation="relu", batchnorm=True)
    assert out.shape == (batch, decoder_dim[-1]), out.shape
    assert out.dtype == jnp.float32
    assert bool(jnp.all(jnp.isfinite(out)))
    assert bool(jnp.allclose(out, ref, rtol=1e-4, atol=1e-4)), \
        float(jnp.max(jnp.abs(out - ref)))

    # --- Test 2: batchnorm=False, tanh, f32, batch-gridded ("parallel") -----
    batch2 = 16
    key, kz2, kp2 = jax.random.split(key, 3)
    z2 = jax.random.normal(kz2, (batch2, decoder_dim[0]), jnp.float32)
    params2 = init_decoder_params(kp2, decoder_dim)
    prep2 = prepare_decoder_params(params2, batchnorm=False, matmul_dtype=None)
    out2 = jax.block_until_ready(
        decoder_forward(z2, prep2, activation="tanh", batch_tile=8))
    ref2 = decoder_reference(z2, params2, activation="tanh", batchnorm=False)
    assert out2.shape == (batch2, decoder_dim[-1]), out2.shape
    assert bool(jnp.all(jnp.isfinite(out2)))
    assert bool(jnp.allclose(out2, ref2, rtol=1e-4, atol=1e-4)), \
        float(jnp.max(jnp.abs(out2 - ref2)))

    # --- Test 3: batchnorm=True, bf16 MXU operands (weights stored bf16) ----
    prep3 = prepare_decoder_params(params, batchnorm=True,
                                   matmul_dtype=jnp.bfloat16)
    out3 = jax.block_until_ready(decoder_forward(z, prep3, activation="relu"))
    assert out3.shape == (batch, decoder_dim[-1]), out3.shape
    assert bool(jnp.all(jnp.isfinite(out3)))
    assert bool(jnp.allclose(out3, ref, rtol=1e-1, atol=1e-1)), \
        float(jnp.max(jnp.abs(out3 - ref)))

    print("KERNEL_OK")
</pallas_src>

<mosaic_0001>
module attributes {stable_mosaic.version = 11 : i64} {
  func.func @_fused_decoder_kernel(%arg0: i32, %arg1: memref<8x32xf32, #tpu.memory_space<vmem>>, %arg2: memref<32x128xf32, #tpu.memory_space<vmem>>, %arg3: memref<128x128xf32, #tpu.memory_space<vmem>>, %arg4: memref<128x128xf32, #tpu.memory_space<vmem>>, %arg5: memref<5x128xf32, #tpu.memory_space<vmem>>, %arg6: memref<8x128xf32, #tpu.memory_space<vmem>>) attributes {dimension_semantics = [#tpu.dimension_semantics<arbitrary>], iteration_bounds = array<i64: 1>, scalar_prefetch = 0 : i64, scratch_operands = 0 : i64, tpu.core_type = #tpu.core_type<tc>, window_params = [{transform_indices = @transform_0, window_bounds = array<i64: 8, 32>}, {pipeline_mode = #tpu.pipeline_mode<synchronous>, transform_indices = @transform_1, window_bounds = array<i64: 32, 128>}, {pipeline_mode = #tpu.pipeline_mode<synchronous>, transform_indices = @transform_2, window_bounds = array<i64: 128, 128>}, {pipeline_mode = #tpu.pipeline_mode<synchronous>, transform_indices = @transform_3, window_bounds = array<i64: 128, 128>}, {pipeline_mode = #tpu.pipeline_mode<synchronous>, transform_indices = @transform_4, window_bounds = array<i64: 5, 128>}, {transform_indices = @transform_5, window_bounds = array<i64: 8, 128>}]} {
    %c0 = arith.constant 0 : index
    %c0_0 = arith.constant 0 : index
    %0 = vector.load %arg1[%c0, %c0_0] : memref<8x32xf32, #tpu.memory_space<vmem>>, vector<8x32xf32>
    %c0_1 = arith.constant 0 : index
    %c0_2 = arith.constant 0 : index
    %1 = vector.load %arg5[%c0_1, %c0_2] : memref<5x128xf32, #tpu.memory_space<vmem>>, vector<5x128xf32>
    %c0_3 = arith.constant 0 : index
    %c0_4 = arith.constant 0 : index
    %2 = vector.load %arg2[%c0_3, %c0_4] : memref<32x128xf32, #tpu.memory_space<vmem>>, vector<32x128xf32>
    %cst = arith.constant dense<0.000000e+00> : vector<8x128xf32>
    %3 = tpu.matmul %0, %2, %cst {dimension_numbers = #tpu.dot_dimension_numbers<[1], [0], [0], [1], [0, 0, 1, 1], [], []>} : vector<8x32xf32>, vector<32x128xf32>, vector<8x128xf32> -> vector<8x128xf32>
    %4 = vector.extract_strided_slice %1 {offsets = [0, 0], sizes = [1, 128], strides = [1, 1]} : vector<5x128xf32> to vector<1x128xf32>
    %5 = vector.extract_strided_slice %1 {offsets = [1, 0], sizes = [1, 128], strides = [1, 1]} : vector<5x128xf32> to vector<1x128xf32>
    %cst_5 = arith.constant dense<0.000000e+00> : vector<128xf32>
    %6 = vector.multi_reduction <add>, %3, %cst_5 [0] : vector<8x128xf32> to vector<128xf32>
    %7 = vector.shape_cast %6 : vector<128xf32> to vector<1x128xf32>
    %8 = arith.mulf %3, %3 : vector<8x128xf32>
    %cst_6 = arith.constant dense<0.000000e+00> : vector<128xf32>
    %9 = vector.multi_reduction <add>, %8, %cst_6 [0] : vector<8x128xf32> to vector<128xf32>
    %10 = vector.shape_cast %9 : vector<128xf32> to vector<1x128xf32>
    %cst_7 = arith.constant 1.250000e-01 : f32
    %11 = vector.broadcast %cst_7 : f32 to vector<1x128xf32>
    %12 = arith.mulf %7, %11 : vector<1x128xf32>
    %cst_8 = arith.constant 1.250000e-01 : f32
    %13 = vector.broadcast %cst_8 : f32 to vector<1x128xf32>
    %14 = arith.mulf %10, %13 : vector<1x128xf32>
    %15 = arith.mulf %12, %12 : vector<1x128xf32>
    %16 = arith.subf %14, %15 : vector<1x128xf32>
    %cst_9 = arith.constant 0.000000e+00 : f32
    %17 = vector.broadcast %cst_9 : f32 to vector<1x128xf32>
    %18 = arith.maximumf %16, %17 : vector<1x128xf32>
    %19 = vector.broadcast %12 : vector<1x128xf32> to vector<8x128xf32>
    %20 = arith.subf %3, %19 : vector<8x128xf32>
    %cst_10 = arith.constant 9.99999974E-6 : f32
    %21 = vector.broadcast %cst_10 : f32 to vector<1x128xf32>
    %22 = arith.addf %18, %21 : vector<1x128xf32>
    %23 = math.rsqrt %22 : vector<1x128xf32>
    %24 = vector.broadcast %23 : vector<1x128xf32> to vector<8x128xf32>
    %25 = arith.mulf %20, %24 : vector<8x128xf32>
    %26 = vector.broadcast %4 : vector<1x128xf32> to vector<8x128xf32>
    %27 = arith.mulf %26, %25 : vector<8x128xf32>
    %28 = vector.broadcast %5 : vector<1x128xf32> to vector<8x128xf32>
    %29 = arith.addf %27, %28 : vector<8x128xf32>
    %cst_11 = arith.constant 0.000000e+00 : f32
    %30 = vector.broadcast %cst_11 : f32 to vector<8x128xf32>
    %31 = arith.maximumf %29, %30 : vector<8x128xf32>
    %c0_12 = arith.constant 0 : index
    %c0_13 = arith.constant 0 : index
    %32 = vector.load %arg3[%c0_12, %c0_13] : memref<128x128xf32, #tpu.memory_space<vmem>>, vector<128x128xf32>
    %cst_14 = arith.constant dense<0.000000e+00> : vector<8x128xf32>
    %33 = tpu.matmul %31, %32, %cst_14 {dimension_numbers = #tpu.dot_dimension_numbers<[1], [0], [0], [1], [0, 0, 1, 1], [], []>} : vector<8x128xf32>, vector<128x128xf32>, vector<8x128xf32> -> vector<8x128xf32>
    %34 = vector.extract_strided_slice %1 {offsets = [2, 0], sizes = [1, 128], strides = [1, 1]} : vector<5x128xf32> to vector<1x128xf32>
    %35 = vector.extract_strided_slice %1 {offsets = [3, 0], sizes = [1, 128], strides = [1, 1]} : vector<5x128xf32> to vector<1x128xf32>
    %cst_15 = arith.constant dense<0.000000e+00> : vector<128xf32>
    %36 = vector.multi_reduction <add>, %33, %cst_15 [0] : vector<8x128xf32> to vector<128xf32>
    %37 = vector.shape_cast %36 : vector<128xf32> to vector<1x128xf32>
    %38 = arith.mulf %33, %33 : vector<8x128xf32>
    %cst_16 = arith.constant dense<0.000000e+00> : vector<128xf32>
    %39 = vector.multi_reduction <add>, %38, %cst_16 [0] : vector<8x128xf32> to vector<128xf32>
    %40 = vector.shape_cast %39 : vector<128xf32> to vector<1x128xf32>
    %cst_17 = arith.constant 1.250000e-01 : f32
    %41 = vector.broadcast %cst_17 : f32 to vector<1x128xf32>
    %42 = arith.mulf %37, %41 : vector<1x128xf32>
    %cst_18 = arith.constant 1.250000e-01 : f32
    %43 = vector.broadcast %cst_18 : f32 to vector<1x128xf32>
    %44 = arith.mulf %40, %43 : vector<1x128xf32>
    %45 = arith.mulf %42, %42 : vector<1x128xf32>
    %46 = arith.subf %44, %45 : vector<1x128xf32>
    %cst_19 = arith.constant 0.000000e+00 : f32
    %47 = vector.broadcast %cst_19 : f32 to vector<1x128xf32>
    %48 = arith.maximumf %46, %47 : vector<1x128xf32>
    %49 = vector.broadcast %42 : vector<1x128xf32> to vector<8x128xf32>
    %50 = arith.subf %33, %49 : vector<8x128xf32>
    %cst_20 = arith.constant 9.99999974E-6 : f32
    %51 = vector.broadcast %cst_20 : f32 to vector<1x128xf32>
    %52 = arith.addf %48, %51 : vector<1x128xf32>
    %53 = math.rsqrt %52 : vector<1x128xf32>
    %54 = vector.broadcast %53 : vector<1x128xf32> to vector<8x128xf32>
    %55 = arith.mulf %50, %54 : vector<8x128xf32>
    %56 = vector.broadcast %34 : vector<1x128xf32> to vector<8x128xf32>
    %57 = arith.mulf %56, %55 : vector<8x128xf32>
    %58 = vector.broadcast %35 : vector<1x128xf32> to vector<8x128xf32>
    %59 = arith.addf %57, %58 : vector<8x128xf32>
    %cst_21 = arith.constant 0.000000e+00 : f32
    %60 = vector.broadcast %cst_21 : f32 to vector<8x128xf32>
    %61 = arith.maximumf %59, %60 : vector<8x128xf32>
    %c0_22 = arith.constant 0 : index
    %c0_23 = arith.constant 0 : index
    %62 = vector.load %arg4[%c0_22, %c0_23] : memref<128x128xf32, #tpu.memory_space<vmem>>, vector<128x128xf32>
    %cst_24 = arith.constant dense<0.000000e+00> : vector<8x128xf32>
    %63 = tpu.matmul %61, %62, %cst_24 {dimension_numbers = #tpu.dot_dimension_numbers<[1], [0], [0], [1], [0, 0, 1, 1], [], []>} : vector<8x128xf32>, vector<128x128xf32>, vector<8x128xf32> -> vector<8x128xf32>
    %64 = vector.extract_strided_slice %1 {offsets = [4, 0], sizes = [1, 128], strides = [1, 1]} : vector<5x128xf32> to vector<1x128xf32>
    %65 = vector.broadcast %64 : vector<1x128xf32> to vector<8x128xf32>
    %66 = arith.addf %63, %65 : vector<8x128xf32>
    %c0_25 = arith.constant 0 : index
    %c0_26 = arith.constant 0 : index
    %67 = vector.load %arg6[%c0_25, %c0_26] : memref<8x128xf32, #tpu.memory_space<vmem>>, vector<8x128xf32>
    tpu.vector_store %arg6[%c0_25, %c0_26], %66 {strides = array<i32>} : memref<8x128xf32, #tpu.memory_space<vmem>>, vector<8x128xf32>,
    return
  }
  func.func @transform_0(%arg0: i32) -> (i32, i32) {
    %c0_i32 = arith.constant 0 : i32
    %c0_i32_0 = arith.constant 0 : i32
    return %arg0, %c0_i32 : i32, i32
  }
  func.func @transform_1(%arg0: i32) -> (i32, i32) {
    %c0_i32 = arith.constant 0 : i32
    %c0_i32_0 = arith.constant 0 : i32
    %c0_i32_1 = arith.constant 0 : i32
    return %c0_i32, %c0_i32_0 : i32, i32
  }
  func.func @transform_2(%arg0: i32) -> (i32, i32) {
    %c0_i32 = arith.constant 0 : i32
    %c0_i32_0 = arith.constant 0 : i32
    %c0_i32_1 = arith.constant 0 : i32
    return %c0_i32, %c0_i32_0 : i32, i32
  }
  func.func @transform_3(%arg0: i32) -> (i32, i32) {
    %c0_i32 = arith.constant 0 : i32
    %c0_i32_0 = arith.constant 0 : i32
    %c0_i32_1 = arith.constant 0 : i32
    return %c0_i32, %c0_i32_0 : i32, i32
  }
  func.func @transform_4(%arg0: i32) -> (i32, i32) {
    %c0_i32 = arith.constant 0 : i32
    %c0_i32_0 = arith.constant 0 : i32
    %c0_i32_1 = arith.constant 0 : i32
    return %c0_i32, %c0_i32_0 : i32, i32
  }
  func.func @transform_5(%arg0: i32) -> (i32, i32) {
    %c0_i32 = arith.constant 0 : i32
    %c0_i32_0 = arith.constant 0 : i32
    return %arg0, %c0_i32 : i32, i32
  }
}

</mosaic_0001>

<bundles_post_ra>
// kernel: tpu_custom_call.1
= control target key start
LH: loop header
LB: loop body
LE: loop exit
PB: predicated region body
PF: predicated region fallthrough
CT: control target
= control target key end

     0   :  { %10 = vsyncpa [#allocation3], 0  ;;  %s518_s0 = inlined_call_operand.hbm [shape: f32[8,32], index: 0, kind: input, shape index: {}]   ;;  %s519_s1 = inlined_call_operand.hbm [shape: f32[32,128], index: 1, kind: input, shape index: {}]   ;;  %s520_s2 = inlined_call_operand.hbm [shape: f32[128,128], index: 2, kind: input, shape index: {}]   ;;  %s521_s3 = inlined_call_operand.hbm [shape: f32[128,128], index: 3, kind: input, shape index: {}]   ;;  %s522_s4 = inlined_call_operand.hbm [shape: f32[5,128], index: 4, kind: input, shape index: {}]   ;;  %s523_s5 = inlined_call_operand.hbm [shape: f32[8,128], index: 5, kind: output, shape index: {}]  }
   0x1   :  { %11 = vsyncpa [#allocation6], 0 }
   0x2   :  { %12 = vsyncpa [#allocation9], 0  ;;  %s29_s20 = sshll.u32 %s519_s1, 4  ;;  %s30_s20 = int_to_ptr.hbm [resolvable:$true] %s29_s20 }
   0x3   :  { %13 = vsyncpa [#allocation4], 0  ;;  %s455_s21 = smov [#allocation5]   ;;  %s55_s25 = sshll.u32 %s521_s3, 4  ;;  %s56_s25 = int_to_ptr.hbm [resolvable:$true] %s55_s25 }
   0x4   :  { %s31_s22 = sshll.u32 %s455_s21, 4  ;;  %s456_s26 = smov 128   ;;  %s32_s22 = int_to_ptr.vmem [resolvable:$true] %s31_s22 }
   0x5   :  { %s457_s27 = smov 8   ;;  %s458_s28 = smov [#allocation8]  }
   0x6   :  { %37 = dma.hbm_to_vmem [thread:$0]  %s30_s20, 512, %s32_s22, [#allocation6], %s456_s26, %s456_s26, %s457_s27  }
   0x7   :  { %s57_s29 = sshll.u32 %s458_s28, 4  ;;  %s19_s7 = sshll.u32 %s518_s0, 4  ;;  %s58_s29 = int_to_ptr.vmem [resolvable:$true] %s57_s29  ;;  %s20_s7 = int_to_ptr.hbm [resolvable:$true] %s19_s7 }
   0x8   :  { %63 = dma.hbm_to_vmem [thread:$0]  %s56_s25, 2048, %s58_s29, [#allocation9], %s456_s26, %s456_s26, %s457_s27  }
   0x9   :  { %s42_s9 = sshll.u32 %s520_s2, 4  ;;  %s459_s10 = smov [#allocation2]   ;;  %s43_s9 = int_to_ptr.hbm [resolvable:$true] %s42_s9 }
   0xa   :  { %s21_s11 = sshll.u32 %s459_s10, 4  ;;  %s460_s3 = smov [#allocation7]   ;;  %s22_s11 = int_to_ptr.vmem [resolvable:$true] %s21_s11 }
   0xb   :  { %24 = dma.hbm_to_vmem [thread:$0]  %s20_s7, 128, %s22_s11, [#allocation3]  }
   0xc   :  { %s44_s12 = sshll.u32 %s460_s3, 4  ;;  %s69_s15 = sshll.u32 %s522_s4, 4  ;;  %s45_s12 = int_to_ptr.vmem [resolvable:$true] %s44_s12  ;;  %s70_s15 = int_to_ptr.hbm [resolvable:$true] %s69_s15 }
   0xd   :  { %50 = dma.hbm_to_vmem [thread:$0]  %s43_s9, 2048, %s45_s12, [#allocation6], %s456_s26, %s456_s26, %s457_s27  }
   0xe   :  { %s461_s0 = smov [#allocation10]  }
   0xf   :  { %s71_s16 = sshll.u32 %s461_s0, 4  ;;  %s72_s16 = int_to_ptr.vmem [resolvable:$true] %s71_s16 }
  0x10   :  { %74 = dma.hbm_to_vmem [thread:$0]  %s70_s15, 128, %s72_s16, [#allocation9]  }
  0x11   :  { %447 = dma.done.wait [#allocation3], 128  }
  0x12   :  { %448 = vsyncadd [#allocation3], 4294967168 }
  0x13   :  { %449 = dma.done.wait [#allocation6], 2560  }
  0x14   :  { %450 = vsyncadd [#allocation6], 4294964736 }
  0x15   :  { %451 = dma.done.wait [#allocation9], 2176  }
  0x16   :  { %452 = vsyncadd [#allocation9], 4294965120  ;;  %v100_v0 = vld [vmem:[#allocation5 + $0x18] sm:$0xff]  ;;  %v99_v1 = vld [vmem:[#allocation5 + $0x10] sm:$0xff]  ;;  %vm101_vm0 = vcmask 261120   ;;  %s462_s2 = smov [#allocation11]  }
  0x17   :  { %117 = vmatpush.msra.mxu0 %v100_v0  ;;  %v98_v2 = vld [vmem:[#allocation5 + $0x8] sm:$0xff]  ;;  %v97_v3 = vld [vmem:[#allocation5] sm:$0xff]  ;;  %v95_v4 = vld [vmem:[#allocation2] sm:$0xff]  ;;  %s276_s4 = sshll.u32 %s462_s2, 4  ;;  %s278_s19 = sshll.u32 %s523_s5, 4  ;;  %s277_s4 = int_to_ptr.vmem [resolvable:$true] %s276_s4  ;;  %s279_s19 = int_to_ptr.hbm [resolvable:$true] %s278_s19 }
  0x18   :  { %v176_v5 = vld [vmem:[#allocation7 + $0x78] sm:$0xff]  ;;  %v175_v6 = vld [vmem:[#allocation7 + $0x70] sm:$0xff]  ;;  %v174_v7 = vld [vmem:[#allocation7 + $0x68] sm:$0xff] }
  0x19   :  { %118 = vmatpush.msra.mxu0 %v99_v1  ;;  %177 = vmatpush.msra.mxu1 %v176_v5  ;;  %v173_v8 = vld [vmem:[#allocation7 + $0x60] sm:$0xff]  ;;  %v172_v9 = vld [vmem:[#allocation7 + $0x58] sm:$0xff]  ;;  %v171_v10 = vld [vmem:[#allocation7 + $0x50] sm:$0xff] }
  0x1a   :  { %v170_v11 = vld [vmem:[#allocation7 + $0x48] sm:$0xff]  ;;  %v169_v12 = vld [vmem:[#allocation7 + $0x40] sm:$0xff]  ;;  %v168_v16 = vld [vmem:[#allocation7 + $0x38] sm:$0xff] }
  0x1b   :  { %119 = vmatpush.msra.mxu0 %v98_v2  ;;  %178 = vmatpush.msra.mxu1 %v175_v6  ;;  %v167_v19 = vld [vmem:[#allocation7 + $0x30] sm:$0xff]  ;;  %v166_v22 = vld [vmem:[#allocation7 + $0x28] sm:$0xff]  ;;  %v165_v25 = vld [vmem:[#allocation7 + $0x20] sm:$0xff] }
  0x1c   :  { %v164_v28 = vld [vmem:[#allocation7 + $0x18] sm:$0xff]  ;;  %v163_v29 = vld [vmem:[#allocation7 + $0x10] sm:$0xff]  ;;  %v162_v32 = vld [vmem:[#allocation7 + $0x8] sm:$0xff] }
  0x1d   :  { %120 = vmatpush.msra.mxu0 %v97_v3  ;;  %179 = vmatpush.msra.mxu1 %v174_v7  ;;  %v161_v35 = vld [vmem:[#allocation7] sm:$0xff]  ;;  %v248_v56 = vld [vmem:[#allocation8 + $0x78] sm:$0xff]  ;;  %v247_v57 = vld [vmem:[#allocation8 + $0x70] sm:$0xff] }
  0x1e   :  { %290 = vmatmul.msk.f32.vlgmr.msra.gmra.mxu0 %vm101_vm0, %v95_v4  ;;  %v508_v46 = vld [vmem:[#allocation10] sm:$0x1f]  ;;  %250 = vmatpush.msra.mxu2 %v248_v56  ;;  %v246_v58 = vld [vmem:[#allocation8 + $0x68] sm:$0xff]  ;;  %v244_v60 = vld [vmem:[#allocation8 + $0x58] sm:$0xff] }
  0x1f   :  { %180 = vmatpush.msra.mxu1 %v173_v8  ;;  %v156_v49 = vperm.slane %v508_v46, 0  ;;  %v158_v52 = vperm.slane %v508_v46, 1  ;;  %v245_v59 = vld [vmem:[#allocation8 + $0x60] sm:$0xff]  ;;  %v243_v61 = vld [vmem:[#allocation8 + $0x50] sm:$0xff]  ;;  %v242_v62 = vld [vmem:[#allocation8 + $0x48] sm:$0xff] }
  0x20   :  { %251 = vmatpush.msra.mxu2 %v247_v57  ;;  %v241_v63 = vld [vmem:[#allocation8 + $0x40] sm:$0xff]  ;;  %v240_v3 = vld [vmem:[#allocation8 + $0x38] sm:$0xff]  ;;  %v239_v6 = vld [vmem:[#allocation8 + $0x30] sm:$0xff] }
  0x21   :  { %181 = vmatpush.msra.mxu1 %v172_v9  ;;  %v238_v9 = vld [vmem:[#allocation8 + $0x28] sm:$0xff] }
  0x22   :  { %252 = vmatpush.msra.mxu2 %v246_v58 }
  0x23   :  { %182 = vmatpush.msra.mxu1 %v171_v10 }
  0x24   :  { %253 = vmatpush.msra.mxu2 %v245_v59 }
  0x25   :  { %183 = vmatpush.msra.mxu1 %v170_v11 }
  0x26   :  { %254 = vmatpush.msra.mxu2 %v244_v60 }
  0x27   :  { %184 = vmatpush.msra.mxu1 %v169_v12  ;;  %v237_v12 = vld [vmem:[#allocation8 + $0x20] sm:$0xff] }
  0x28   :  { %255 = vmatpush.msra.mxu2 %v243_v61 }
  0x29   :  { %185 = vmatpush.msra.mxu1 %v168_v16  ;;  %v235_v16 = vld [vmem:[#allocation8 + $0x10] sm:$0xff] }
  0x2a   :  { %256 = vmatpush.msra.mxu2 %v242_v62 }
  0x2b   :  { %186 = vmatpush.msra.mxu1 %v167_v19  ;;  %v234_v19 = vld [vmem:[#allocation8 + $0x8] sm:$0xff] }
  0x2c   :  { %257 = vmatpush.msra.mxu2 %v241_v63 }
  0x2d   :  { %187 = vmatpush.msra.mxu1 %v166_v22  ;;  %v233_v22 = vld [vmem:[#allocation8] sm:$0xff] }
  0x2e   :  { %258 = vmatpush.msra.mxu2 %v240_v3 }
  0x2f   :  { %188 = vmatpush.msra.mxu1 %v165_v25 }
  0x30   :  { %259 = vmatpush.msra.mxu2 %v239_v6 }
  0x31   :  { %189 = vmatpush.msra.mxu1 %v164_v28 }
  0x32   :  { %260 = vmatpush.msra.mxu2 %v238_v9 }
  0x33   :  { %190 = vmatpush.msra.mxu1 %v163_v29 }
  0x34   :  { %261 = vmatpush.msra.mxu2 %v237_v12 }
  0x35   :  { %191 = vmatpush.msra.mxu1 %v162_v32 }
  0x37   :  { %192 = vmatpush.msra.mxu1 %v161_v35  ;;  %v228_v35 = vperm.slane %v508_v46, 2 }
  0x9b   :  { %v122_v13 = vpop.f32.mrf.mxu0 }
  0x9c   :  { %v125_v14 = vrot.slane %v122_v13, 4  ;;  %v131_v15 = vmul.f32 %v122_v13, %v122_v13 }
  0x9e   :  { %v126_v17 = vadd.f32 %v125_v14, %v122_v13  ;;  %v132_v18 = vrot.slane %v131_v15, 4 }
  0xa0   :  { %v127_v20 = vrot.slane %v126_v17, 2  ;;  %v133_v21 = vadd.f32 %v132_v18, %v131_v15  ;;  %v236_v15 = vld [vmem:[#allocation8 + $0x18] sm:$0xff] }
  0xa1   :  { %262 = vmatpush.msra.mxu2 %v236_v15 }
  0xa2   :  { %v128_v23 = vadd.f32 %v127_v20, %v126_v17  ;;  %v134_v24 = vrot.slane %v133_v21, 2 }
  0xa3   :  { %263 = vmatpush.msra.mxu2 %v235_v16 }
  0xa4   :  { %v129_v26 = vrot.slane %v128_v23, 1  ;;  %v135_v27 = vadd.f32 %v134_v24, %v133_v21 }
  0xa5   :  { %264 = vmatpush.msra.mxu2 %v234_v19 }
  0xa6   :  { %v130_v30 = vadd.f32 %v129_v26, %v128_v23  ;;  %v136_v31 = vrot.slane %v135_v27, 1 }
  0xa7   :  { %265 = vmatpush.msra.mxu2 %v233_v22 }
  0xa8   :  { %v137_v33 = vadd.f32 %v136_v31, %v135_v27  ;;  %v138_v34 = vmul.f32 0.125, %v130_v30 }
  0xaa   :  { %v139_v36 = vmul.f32 0.125, %v137_v33  ;;  %v140_v37 = vmul.f32 %v138_v34, %v138_v34  ;;  %v143_v48 = vsub.f32 %v122_v13, %v138_v34 }
  0xac   :  { %v141_v38 = vsub.f32 %v139_v36, %v140_v37 }
  0xae   :  { %v142_v39 = vmax.f32 %v141_v38, 0.0  ;;  %v230_v38 = vperm.slane %v508_v46, 3 }
  0xb0   :  { %v144_v40 = vadd.f32 1e-05, %v142_v39 }
  0xb2   :  { %299 = vrsqrt.f32 %v144_v40  ;;  %vm151_vm2 = vweird.f32 %v144_v40 }
  0xb8   :  { %v300_v41 = vpop.eup %299 }
  0xb9   :  { %v146_v42 = vmul.f32 %v300_v41, %v144_v40  ;;  %vm152_vm1 = vweird.f32 %v300_v41 }
  0xba   :  { %vm153_vm3 = vmor %vm151_vm2, %vm152_vm1 }
  0xbb   :  { %v147_v43 = vmul.f32 %v300_v41, %v146_v42  ;;  %v249_v42 = vperm.slane %v508_v46, 4 }
  0xbd   :  { %v148_v44 = vmul.f32 0.5, %v147_v43 }
  0xbf   :  { %v149_v45 = vsub.f32 1.5, %v148_v44 }
  0xc1   :  { %v150_v47 = vmul.f32 %v300_v41, %v149_v45 }
  0xc3   :  { %v154_v50 = vsel %vm153_vm3, %v300_v41, %v150_v47 }
  0xc4   :  { %v155_v51 = vmul.f32 %v154_v50, %v143_v48 }
  0xc6   :  { %v157_v53 = vmul.f32 %v156_v49, %v155_v51 }
  0xc8   :  { %v159_v54 = vadd.f32 %v158_v52, %v157_v53 }
  0xca   :  { %v160_v55 = vmax.f32 %v159_v54, 0.0 }
  0xcc   :  { %193 = vmatmul.f32.vlgmr.msra.gmra.mxu1 %v160_v55 }
 0x149   :  { %v194_v0 = vpop.f32.mrf.mxu1 }
 0x14a   :  { %v197_v1 = vrot.slane %v194_v0, 4  ;;  %v203_v2 = vmul.f32 %v194_v0, %v194_v0 }
 0x14c   :  { %v198_v4 = vadd.f32 %v197_v1, %v194_v0  ;;  %v204_v5 = vrot.slane %v203_v2, 4 }
 0x14e   :  { %v199_v7 = vrot.slane %v198_v4, 2  ;;  %v205_v8 = vadd.f32 %v204_v5, %v203_v2 }
 0x150   :  { %v200_v10 = vadd.f32 %v199_v7, %v198_v4  ;;  %v206_v11 = vrot.slane %v205_v8, 2 }
 0x152   :  { %v201_v13 = vrot.slane %v200_v10, 1  ;;  %v207_v14 = vadd.f32 %v206_v11, %v205_v8 }
 0x154   :  { %v202_v17 = vadd.f32 %v201_v13, %v200_v10  ;;  %v208_v18 = vrot.slane %v207_v14, 1 }
 0x156   :  { %v209_v20 = vadd.f32 %v208_v18, %v207_v14  ;;  %v210_v21 = vmul.f32 0.125, %v202_v17 }
 0x158   :  { %v211_v23 = vmul.f32 0.125, %v209_v20  ;;  %v212_v24 = vmul.f32 %v210_v21, %v210_v21  ;;  %v215_v34 = vsub.f32 %v194_v0, %v210_v21 }
 0x15a   :  { %v213_v25 = vsub.f32 %v211_v23, %v212_v24 }
 0x15c   :  { %v214_v26 = vmax.f32 %v213_v25, 0.0 }
 0x15e   :  { %v216_v27 = vadd.f32 1e-05, %v214_v26 }
 0x160   :  { %301 = vrsqrt.f32 %v216_v27  ;;  %vm223_vm5 = vweird.f32 %v216_v27 }
 0x166   :  { %v302_v28 = vpop.eup %301 }
 0x167   :  { %v218_v29 = vmul.f32 %v302_v28, %v216_v27  ;;  %vm224_vm4 = vweird.f32 %v302_v28 }
 0x168   :  { %vm225_vm6 = vmor %vm223_vm5, %vm224_vm4 }
 0x169   :  { %v219_v30 = vmul.f32 %v302_v28, %v218_v29 }
 0x16b   :  { %v220_v31 = vmul.f32 0.5, %v219_v30 }
 0x16d   :  { %v221_v32 = vsub.f32 1.5, %v220_v31 }
 0x16f   :  { %v222_v33 = vmul.f32 %v302_v28, %v221_v32 }
 0x171   :  { %v226_v36 = vsel %vm225_vm6, %v302_v28, %v222_v33 }
 0x172   :  { %v227_v37 = vmul.f32 %v226_v36, %v215_v34 }
 0x174   :  { %v229_v39 = vmul.f32 %v228_v35, %v227_v37 }
 0x176   :  { %v231_v40 = vadd.f32 %v230_v38, %v229_v39 }
 0x178   :  { %v232_v41 = vmax.f32 %v231_v40, 0.0 }
 0x17a   :  { %266 = vmatmul.f32.vlgmr.msra.gmra.mxu2 %v232_v41 }
 0x1fd   :  { %v267_v43 = vpop.f32.mrf.mxu2 }
 0x1fe   :  { %v268_v44 = vadd.f32 %v267_v43, %v249_v42 }
 0x200   :  { %270 = vst [vmem:[#allocation11] sm:$0xff] %v268_v44 }
 0x201   :  { %281 = dma.vmem_to_hbm [thread:$0]  %s277_s4, 128, %s279_s19, [#allocation4]  }
 0x202   :  { %453 = dma.done.wait [#allocation4], 128  }
 0x203   :  { %454 = vsyncadd [#allocation4], 4294967168 }
 0x204   :  { %286 = vsyncpa [#allocation3], 1 }
 0x205   :  { %287 = vsyncpa [#allocation6], 1 }
 0x206   :  { %288 = vsyncpa [#allocation9], 1 }
 0x207   :  { %289 = vsyncpa [#allocation4], 1 }

</bundles_post_ra>
